<compile_context>
chip_gen: v6e
topology: v6e:2x2x1
jax: 0.10.0
libtpu: 0.0.40
codegen_flags: <defaults>
</compile_context>

<pallas_src>
import jax
import jax.numpy as jnp
from jax import lax
from jax.experimental import pallas as pl
from jax.experimental.pallas import tpu as pltpu


def _mlp_softmax_kernel(x_ref, w1T_ref, b1_ref, w2T_ref, b2_ref,
                        w3T_ref, b3_ref, oT_ref):
    """Fused 3-layer MLP + softmax.

    x_ref:  (Bt, obs)            -- untransposed, contiguous HBM block
    wKT:    (out, in)            -- pre-transposed weights (resident)
    bK:     (out, 1)             -- biases as columns (resident)
    oT_ref: (act, Bt)            -- lane-dense output (batch on lanes)
    All activations are kept as (features, Bt).
    """
    x = x_ref[...]                                              # (Bt, obs)

    # fc1 + tanh : contract obs axes -> (hidden, Bt)   (NT matmul on the MXU)
    h1 = lax.dot_general(w1T_ref[...], x, (((1,), (1,)), ((), ())),
                         preferred_element_type=jnp.float32)
    h1 = jnp.tanh(h1 + b1_ref[...])

    # fc2 + tanh : (hidden, hidden) @ (hidden, Bt) -> (hidden, Bt)
    h2 = jnp.dot(w2T_ref[...], h1, preferred_element_type=jnp.float32)
    h2 = jnp.tanh(h2 + b2_ref[...])

    # fc3 : (act, hidden) @ (hidden, Bt) -> (act, Bt)
    logits = jnp.dot(w3T_ref[...], h2, preferred_element_type=jnp.float32)
    logits = logits + b3_ref[...]

    # numerically-stable softmax over the action axis (axis 0 = sublanes)
    m = jnp.max(logits, axis=0, keepdims=True)                  # (1, Bt)
    e = jnp.exp(logits - m)                                     # (act, Bt)
    denom = jnp.sum(e, axis=0, keepdims=True)                   # (1, Bt)
    # exact divide: rows sum to 1 within f32 precision (act is tiny -> cheap)
    oT_ref[...] = (e / denom).astype(oT_ref.dtype)


def _choose_batch_tiling(B):
    """Pick (batch_tile, num_tiles) from the static batch size B."""
    # Round up to a 256 multiple: lane-dense (act, Bt) output and
    # (Bt, obs) input blocks both want Bt % 128 == 0; 256 keeps headroom.
    b256 = ((B + 255) // 256) * 256
    max_tile = 8192                       # BW-roofline tile; fits v7x VMEM easily
    if b256 <= max_tile:
        return b256, 1                    # single tile, grid=(1,)
    num_tiles = -(-b256 // max_tile)      # ceil
    num_tiles = max(4, num_tiles)         # >=4 steps -> pipelining per core
    if num_tiles % 2:
        num_tiles += 1                    # even grid for v7x's 2 TensorCores
    batch_tile = ((-(-b256 // num_tiles) + 255) // 256) * 256
    return batch_tile, num_tiles


@jax.jit
def policy_gradient_forward(x, params):
    """Fused MLP forward.  x: (B, obs) f32 -> probs (B, action_num) f32.

    params are stored in kernel layout: w: (out, in), b: (out, 1).
    """
    w1T, b1, w2T, b2, w3T, b3 = params
    B, obs = x.shape
    hidden = w1T.shape[0]
    act = w3T.shape[0]

    batch_tile, num_tiles = _choose_batch_tiling(B)
    B_pad = batch_tile * num_tiles
    if B_pad != B:
        x = jnp.pad(x, ((0, B_pad - B), (0, 0)))

    in_specs = [
        pl.BlockSpec((batch_tile, obs),  lambda i: (i, 0)),     # x (tiled, contiguous)
        pl.BlockSpec((hidden, obs),      lambda i: (0, 0)),     # w1T (resident)
        pl.BlockSpec((hidden, 1),        lambda i: (0, 0)),     # b1
        pl.BlockSpec((hidden, hidden),   lambda i: (0, 0)),     # w2T
        pl.BlockSpec((hidden, 1),        lambda i: (0, 0)),     # b2
        pl.BlockSpec((act, hidden),      lambda i: (0, 0)),     # w3T
        pl.BlockSpec((act, 1),           lambda i: (0, 0)),     # b3
    ]
    out_specs = pl.BlockSpec((act, batch_tile), lambda i: (0, i))

    flops = 2 * B_pad * (obs * hidden + hidden * hidden + hidden * act)
    transcendentals = B_pad * (2 * hidden + act)
    bytes_accessed = 4 * (B_pad * (obs + act)
                          + obs * hidden + hidden * hidden + hidden * act
                          + 2 * hidden + act)

    oT = pl.pallas_call(
        _mlp_softmax_kernel,
        out_shape=jax.ShapeDtypeStruct((act, B_pad), jnp.float32),
        grid_spec=pltpu.PrefetchScalarGridSpec(
            num_scalar_prefetch=0,
            grid=(num_tiles,),
            in_specs=in_specs,
            out_specs=out_specs,
        ),
        compiler_params=pltpu.CompilerParams(
            dimension_semantics=("parallel",)),
        cost_estimate=pl.CostEstimate(
            flops=flops,
            transcendentals=transcendentals,
            bytes_accessed=bytes_accessed),
    )(x, w1T, b1, w2T, b2, w3T, b3)

    return oT.T[:B]                       # (B, act), padding dropped


def init_params(key, observation_size, action_num):
    """nn.Linear-style init U(-1/sqrt(fan_in), 1/sqrt(fan_in)), stored in
    kernel layout: w -> (out, in), b -> (out, 1)."""
    hidden_size = observation_size << 1   # as in the PyTorch module
    k = jax.random.split(key, 6)

    def linear(kw, kb, fan_in, fan_out):
        bound = 1.0 / jnp.sqrt(jnp.float32(fan_in))
        wT = jax.random.uniform(kw, (fan_out, fan_in), jnp.float32, -bound, bound)
        b = jax.random.uniform(kb, (fan_out, 1), jnp.float32, -bound, bound)
        return wT, b

    w1T, b1 = linear(k[0], k[1], observation_size, hidden_size)
    w2T, b2 = linear(k[2], k[3], hidden_size, hidden_size)
    w3T, b3 = linear(k[4], k[5], hidden_size, action_num)
    return (w1T, b1, w2T, b2, w3T, b3)


def _reference_forward(x, params):
    w1T, b1, w2T, b2, w3T, b3 = params
    h = jnp.tanh(x @ w1T.T + b1.T)
    h = jnp.tanh(h @ w2T.T + b2.T)
    logits = h @ w3T.T + b3.T
    return jax.nn.softmax(logits, axis=-1)


if __name__ == "__main__":
    observation_size = 16
    action_num = 4
    batch = 300            # ragged: pads to a single 512-wide tile, grid=(1,)

    key = jax.random.PRNGKey(0)
    kx, kp = jax.random.split(key)
    x = jax.random.normal(kx, (batch, observation_size), jnp.float32)
    params = init_params(kp, observation_size, action_num)

    out = policy_gradient_forward(x, params)
    out = jax.block_until_ready(out)

    ref = _reference_forward(x, params)
    assert out.shape == (batch, action_num)
    assert jnp.allclose(out, ref, atol=1e-4, rtol=1e-4)
    # rows must sum to ~1 (exact-divide softmax)
    assert jnp.allclose(jnp.sum(out, axis=-1), jnp.ones((batch,)), atol=1e-4)

    print("KERNEL_OK")
</pallas_src>

<mosaic_0001>
module attributes {stable_mosaic.version = 11 : i64} {
  func.func @_mlp_softmax_kernel(%arg0: i32, %arg1: memref<512x16xf32, #tpu.memory_space<vmem>>, %arg2: memref<32x16xf32, #tpu.memory_space<vmem>>, %arg3: memref<32x1xf32, #tpu.memory_space<vmem>>, %arg4: memref<32x32xf32, #tpu.memory_space<vmem>>, %arg5: memref<32x1xf32, #tpu.memory_space<vmem>>, %arg6: memref<4x32xf32, #tpu.memory_space<vmem>>, %arg7: memref<4x1xf32, #tpu.memory_space<vmem>>, %arg8: memref<4x512xf32, #tpu.memory_space<vmem>>) attributes {dimension_semantics = [#tpu.dimension_semantics<parallel>], iteration_bounds = array<i64: 1>, scalar_prefetch = 0 : i64, scratch_operands = 0 : i64, tpu.core_type = #tpu.core_type<tc>, window_params = [{transform_indices = @transform_0, window_bounds = array<i64: 512, 16>}, {pipeline_mode = #tpu.pipeline_mode<synchronous>, transform_indices = @transform_1, window_bounds = array<i64: 32, 16>}, {pipeline_mode = #tpu.pipeline_mode<synchronous>, transform_indices = @transform_2, window_bounds = array<i64: 32, 1>}, {pipeline_mode = #tpu.pipeline_mode<synchronous>, transform_indices = @transform_3, window_bounds = array<i64: 32, 32>}, {pipeline_mode = #tpu.pipeline_mode<synchronous>, transform_indices = @transform_4, window_bounds = array<i64: 32, 1>}, {pipeline_mode = #tpu.pipeline_mode<synchronous>, transform_indices = @transform_5, window_bounds = array<i64: 4, 32>}, {pipeline_mode = #tpu.pipeline_mode<synchronous>, transform_indices = @transform_6, window_bounds = array<i64: 4, 1>}, {transform_indices = @transform_7, window_bounds = array<i64: 4, 512>}]} {
    %c0 = arith.constant 0 : index
    %c0_0 = arith.constant 0 : index
    %0 = vector.load %arg1[%c0, %c0_0] : memref<512x16xf32, #tpu.memory_space<vmem>>, vector<512x16xf32>
    %c0_1 = arith.constant 0 : index
    %c0_2 = arith.constant 0 : index
    %1 = vector.load %arg2[%c0_1, %c0_2] : memref<32x16xf32, #tpu.memory_space<vmem>>, vector<32x16xf32>
    %cst = arith.constant dense<0.000000e+00> : vector<32x512xf32>
    %2 = tpu.matmul %1, %0, %cst {dimension_numbers = #tpu.dot_dimension_numbers<[1], [1], [0], [0], [0, 0, 1, 0], [], []>} : vector<32x16xf32>, vector<512x16xf32>, vector<32x512xf32> -> vector<32x512xf32>
    %c0_3 = arith.constant 0 : index
    %c0_4 = arith.constant 0 : index
    %3 = vector.load %arg3[%c0_3, %c0_4] : memref<32x1xf32, #tpu.memory_space<vmem>>, vector<32x1xf32>
    %4 = vector.broadcast %3 : vector<32x1xf32> to vector<32x512xf32>
    %5 = arith.addf %2, %4 : vector<32x512xf32>
    %6 = math.tanh %5 : vector<32x512xf32>
    %c0_5 = arith.constant 0 : index
    %c0_6 = arith.constant 0 : index
    %7 = vector.load %arg4[%c0_5, %c0_6] : memref<32x32xf32, #tpu.memory_space<vmem>>, vector<32x32xf32>
    %cst_7 = arith.constant dense<0.000000e+00> : vector<32x512xf32>
    %8 = tpu.matmul %7, %6, %cst_7 {dimension_numbers = #tpu.dot_dimension_numbers<[1], [0], [0], [1], [0, 0, 1, 1], [], []>} : vector<32x32xf32>, vector<32x512xf32>, vector<32x512xf32> -> vector<32x512xf32>
    %c0_8 = arith.constant 0 : index
    %c0_9 = arith.constant 0 : index
    %9 = vector.load %arg5[%c0_8, %c0_9] : memref<32x1xf32, #tpu.memory_space<vmem>>, vector<32x1xf32>
    %10 = vector.broadcast %9 : vector<32x1xf32> to vector<32x512xf32>
    %11 = arith.addf %8, %10 : vector<32x512xf32>
    %12 = math.tanh %11 : vector<32x512xf32>
    %c0_10 = arith.constant 0 : index
    %c0_11 = arith.constant 0 : index
    %13 = vector.load %arg6[%c0_10, %c0_11] : memref<4x32xf32, #tpu.memory_space<vmem>>, vector<4x32xf32>
    %cst_12 = arith.constant dense<0.000000e+00> : vector<4x512xf32>
    %14 = tpu.matmul %13, %12, %cst_12 {dimension_numbers = #tpu.dot_dimension_numbers<[1], [0], [0], [1], [0, 0, 1, 1], [], []>} : vector<4x32xf32>, vector<32x512xf32>, vector<4x512xf32> -> vector<4x512xf32>
    %c0_13 = arith.constant 0 : index
    %c0_14 = arith.constant 0 : index
    %15 = vector.load %arg7[%c0_13, %c0_14] : memref<4x1xf32, #tpu.memory_space<vmem>>, vector<4x1xf32>
    %16 = vector.broadcast %15 : vector<4x1xf32> to vector<4x512xf32>
    %17 = arith.addf %14, %16 : vector<4x512xf32>
    %cst_15 = arith.constant dense<0xFF800000> : vector<512xf32>
    %18 = vector.multi_reduction <maximumf>, %17, %cst_15 [0] : vector<4x512xf32> to vector<512xf32>
    %19 = vector.shape_cast %18 : vector<512xf32> to vector<1x512xf32>
    %20 = vector.broadcast %19 : vector<1x512xf32> to vector<4x512xf32>
    %21 = arith.subf %17, %20 : vector<4x512xf32>
    %22 = math.exp %21 : vector<4x512xf32>
    %cst_16 = arith.constant dense<0.000000e+00> : vector<512xf32>
    %23 = vector.multi_reduction <add>, %22, %cst_16 [0] : vector<4x512xf32> to vector<512xf32>
    %24 = vector.shape_cast %23 : vector<512xf32> to vector<1x512xf32>
    %25 = vector.broadcast %24 : vector<1x512xf32> to vector<4x512xf32>
    %26 = arith.divf %22, %25 : vector<4x512xf32>
    %c0_17 = arith.constant 0 : index
    %c0_18 = arith.constant 0 : index
    %27 = vector.load %arg8[%c0_17, %c0_18] : memref<4x512xf32, #tpu.memory_space<vmem>>, vector<4x512xf32>
    tpu.vector_store %arg8[%c0_17, %c0_18], %26 {strides = array<i32>} : memref<4x512xf32, #tpu.memory_space<vmem>>, vector<4x512xf32>,
    return
  }
  func.func @transform_0(%arg0: i32) -> (i32, i32) {
    %c0_i32 = arith.constant 0 : i32
    %c0_i32_0 = arith.constant 0 : i32
    return %arg0, %c0_i32 : i32, i32
  }
  func.func @transform_1(%arg0: i32) -> (i32, i32) {
    %c0_i32 = arith.constant 0 : i32
    %c0_i32_0 = arith.constant 0 : i32
    %c0_i32_1 = arith.constant 0 : i32
    return %c0_i32, %c0_i32_0 : i32, i32
  }
  func.func @transform_2(%arg0: i32) -> (i32, i32) {
    %c0_i32 = arith.constant 0 : i32
    %c0_i32_0 = arith.constant 0 : i32
    %c0_i32_1 = arith.constant 0 : i32
    return %c0_i32, %c0_i32_0 : i32, i32
  }
  func.func @transform_3(%arg0: i32) -> (i32, i32) {
    %c0_i32 = arith.constant 0 : i32
    %c0_i32_0 = arith.constant 0 : i32
    %c0_i32_1 = arith.constant 0 : i32
    return %c0_i32, %c0_i32_0 : i32, i32
  }
  func.func @transform_4(%arg0: i32) -> (i32, i32) {
    %c0_i32 = arith.constant 0 : i32
    %c0_i32_0 = arith.constant 0 : i32
    %c0_i32_1 = arith.constant 0 : i32
    return %c0_i32, %c0_i32_0 : i32, i32
  }
  func.func @transform_5(%arg0: i32) -> (i32, i32) {
    %c0_i32 = arith.constant 0 : i32
    %c0_i32_0 = arith.constant 0 : i32
    %c0_i32_1 = arith.constant 0 : i32
    return %c0_i32, %c0_i32_0 : i32, i32
  }
  func.func @transform_6(%arg0: i32) -> (i32, i32) {
    %c0_i32 = arith.constant 0 : i32
    %c0_i32_0 = arith.constant 0 : i32
    %c0_i32_1 = arith.constant 0 : i32
    return %c0_i32, %c0_i32_0 : i32, i32
  }
  func.func @transform_7(%arg0: i32) -> (i32, i32) {
    %c0_i32 = arith.constant 0 : i32
    %c0_i32_0 = arith.constant 0 : i32
    return %c0_i32, %arg0 : i32, i32
  }
}

</mosaic_0001>

<bundles_post_ra>
// kernel: policy_gradient_forward.1
= control target key start
LH: loop header
LB: loop body
LE: loop exit
PB: predicated region body
PF: predicated region fallthrough
CT: control target
= control target key end

     0   :  { %vm118_vm0 = vcmask 130048   ;;  %v1241_v3 = vmov 0   ;;  %vm545_vm1 = vcmask 261120   ;;  %vm904_vm2 = vcmask 1043456   ;;  %s1649_s0 = inlined_call_operand.vmem [shape: f32[512,16], index: 0, kind: input, shape index: {}]   ;;  %s1650_s1 = inlined_call_operand.vmem [shape: f32[32,16], index: 1, kind: input, shape index: {}]   ;;  %s1651_s2 = inlined_call_operand.vmem [shape: f32[32,1], index: 2, kind: input, shape index: {}]   ;;  %s1652_s4 = inlined_call_operand.vmem [shape: f32[32,1], index: 4, kind: input, shape index: {}]   ;;  %s1653_s6 = inlined_call_operand.vmem [shape: f32[4,1], index: 6, kind: input, shape index: {}]   ;;  %s1654_s3 = inlined_call_operand.vmem [shape: f32[32,32], index: 3, kind: input, shape index: {}]   ;;  %s1655_s5 = inlined_call_operand.vmem [shape: f32[4,32], index: 5, kind: input, shape index: {}]   ;;  %s1656_s7 = inlined_call_operand.vmem [shape: f32[4,512], index: 7, kind: output, shape index: {}]  }
   0x1   :  { %v57_v0 = vld [vmem:[%s1649_s0 + $0xf8] sm:$0xff]  ;;  %1160 = vset.pattern.permute.xlu1 %v1241_v3  ;;  %1159 = vset.pattern.permute.xlu0 %v1241_v3  ;;  %v56_v5 = vld [vmem:[%s1649_s0 + $0xf0] sm:$0xff]  ;;  %v55_v9 = vld [vmem:[%s1649_s0 + $0xe8] sm:$0xff] }
   0x2   :  { %v89_v1 = vld [vmem:[%s1649_s0 + $0x1f8] sm:$0xff]  ;;  %1077 = vmatprep.subr.msk.mxu0 %vm118_vm0, %v57_v0  ;;  %v88_v6 = vld [vmem:[%s1649_s0 + $0x1f0] sm:$0xff]  ;;  %v87_v10 = vld [vmem:[%s1649_s0 + $0x1e8] sm:$0xff] }
   0x3   :  { %v41_v2 = vld [vmem:[%s1649_s0 + $0x78] sm:$0xff]  ;;  %1117 = vmatprep.subr.msk.mxu1 %vm118_vm0, %v89_v1  ;;  %v40_v7 = vld [vmem:[%s1649_s0 + $0x70] sm:$0xff]  ;;  %v39_v11 = vld [vmem:[%s1649_s0 + $0x68] sm:$0xff] }
   0x4   :  { %v73_v4 = vld [vmem:[%s1649_s0 + $0x178] sm:$0xff]  ;;  %1078 = vmatpush3.xpose.msk.msra.mxu0 %vm118_vm0, %v41_v2  ;;  %v72_v8 = vld [vmem:[%s1649_s0 + $0x170] sm:$0xff]  ;;  %v71_v12 = vld [vmem:[%s1649_s0 + $0x168] sm:$0xff] }
   0x5   :  { %1118 = vmatpush3.xpose.msk.msra.mxu1 %vm118_vm0, %v73_v4  ;;  %1079 = vmatprep.subr.msk.mxu0 %vm118_vm0, %v56_v5  ;;  %v54_v13 = vld [vmem:[%s1649_s0 + $0xe0] sm:$0xff]  ;;  %v53_v17 = vld [vmem:[%s1649_s0 + $0xd8] sm:$0xff]  ;;  %v52_v21 = vld [vmem:[%s1649_s0 + $0xd0] sm:$0xff] }
   0x6   :  { %1119 = vmatprep.subr.msk.mxu1 %vm118_vm0, %v88_v6  ;;  %v86_v14 = vld [vmem:[%s1649_s0 + $0x1e0] sm:$0xff]  ;;  %v85_v18 = vld [vmem:[%s1649_s0 + $0x1d8] sm:$0xff]  ;;  %v84_v22 = vld [vmem:[%s1649_s0 + $0x1d0] sm:$0xff] }
   0x7   :  { %v38_v15 = vld [vmem:[%s1649_s0 + $0x60] sm:$0xff]  ;;  %v37_v19 = vld [vmem:[%s1649_s0 + $0x58] sm:$0xff]  ;;  %v36_v23 = vld [vmem:[%s1649_s0 + $0x50] sm:$0xff] }
   0x8   :  { %1080 = vmatpush3.xpose.msk.msra.mxu0 %vm118_vm0, %v40_v7  ;;  %v70_v16 = vld [vmem:[%s1649_s0 + $0x160] sm:$0xff]  ;;  %v69_v20 = vld [vmem:[%s1649_s0 + $0x158] sm:$0xff]  ;;  %v68_v24 = vld [vmem:[%s1649_s0 + $0x150] sm:$0xff] }
   0x9   :  { %1120 = vmatpush3.xpose.msk.msra.mxu1 %vm118_vm0, %v72_v8  ;;  %1081 = vmatprep.subr.msk.mxu0 %vm118_vm0, %v55_v9  ;;  %v51_v25 = vld [vmem:[%s1649_s0 + $0xc8] sm:$0xff]  ;;  %v1386_v27 = vld [vmem:[%s1650_s1] sm:$0xff]  ;;  %v97_v28 = vld [vmem:[%s1651_s2 + $0x18] sm:$0xff] }
   0xa   :  { %1121 = vmatprep.subr.msk.mxu1 %vm118_vm0, %v87_v10  ;;  %v83_v26 = vld [vmem:[%s1649_s0 + $0x1c8] sm:$0xff]  ;;  %v50_v32 = vld [vmem:[%s1649_s0 + $0xc0] sm:$0xff]  ;;  %1109 = vmatprep.mubr.msk.f32.mxu0 %vm118_vm0, %v1386_v27  ;;  %v96_v34 = vld [vmem:[%s1651_s2 + $0x10] sm:$0xff] }
   0xb   :  { %v35_v29 = vld [vmem:[%s1649_s0 + $0x48] sm:$0xff]  ;;  %v82_v33 = vld [vmem:[%s1649_s0 + $0x1c0] sm:$0xff]  ;;  %1149 = vmatprep.mubr.msk.f32.mxu1 %vm118_vm0, %v1386_v27  ;;  %115 = vperm.xlu0 %1159, %v97_v28   ;;  %v49_v38 = vld [vmem:[%s1649_s0 + $0xb8] sm:$0xff] }
   0xc   :  { %1082 = vmatpush3.xpose.msk.msra.mxu0 %vm118_vm0, %v39_v11  ;;  %v67_v30 = vld [vmem:[%s1649_s0 + $0x148] sm:$0xff]  ;;  %v94_v35 = vld [vmem:[%s1651_s2] sm:$0xff]  ;;  %v81_v39 = vld [vmem:[%s1649_s0 + $0x1b8] sm:$0xff] }
   0xd   :  { %1122 = vmatpush3.xpose.msk.msra.mxu1 %vm118_vm0, %v71_v12  ;;  %1083 = vmatprep.subr.msk.mxu0 %vm118_vm0, %v54_v13  ;;  %v95_v31 = vld [vmem:[%s1651_s2 + $0x8] sm:$0xff]  ;;  %v34_v36 = vld [vmem:[%s1649_s0 + $0x40] sm:$0xff]  ;;  %v524_v40 = vld [vmem:[%s1652_s4 + $0x18] sm:$0xff] }
   0xe   :  { %1123 = vmatprep.subr.msk.mxu1 %vm118_vm0, %v86_v14  ;;  %105 = vperm.xlu1 %1160, %v95_v31   ;;  %v66_v37 = vld [vmem:[%s1649_s0 + $0x140] sm:$0xff]  ;;  %v523_v41 = vld [vmem:[%s1652_s4 + $0x10] sm:$0xff]  ;;  %v33_v42 = vld [vmem:[%s1649_s0 + $0x38] sm:$0xff]  ;;  %v1242_v14 = vmov 0.0  }
   0xf   :  { %110 = vperm.xlu0 %1159, %v96_v34   ;;  %v65_v43 = vld [vmem:[%s1649_s0 + $0x138] sm:$0xff]  ;;  %v48_v44 = vld [vmem:[%s1649_s0 + $0xb0] sm:$0xff]  ;;  %v522_v46 = vld [vmem:[%s1652_s4 + $0x8] sm:$0xff] }
  0x10   :  { %1084 = vmatpush3.xpose.msk.msra.mxu0 %vm118_vm0, %v38_v15  ;;  %v80_v45 = vld [vmem:[%s1649_s0 + $0x1b0] sm:$0xff]  ;;  %v521_v47 = vld [vmem:[%s1652_s4] sm:$0xff]  ;;  %v47_v50 = vld [vmem:[%s1649_s0 + $0xa8] sm:$0xff] }
  0x11   :  { %1124 = vmatpush3.xpose.msk.msra.mxu1 %vm118_vm0, %v70_v16  ;;  %1085 = vmatprep.subr.msk.mxu0 %vm118_vm0, %v53_v17  ;;  %v32_v48 = vld [vmem:[%s1649_s0 + $0x30] sm:$0xff]  ;;  %v79_v51 = vld [vmem:[%s1649_s0 + $0x1a8] sm:$0xff]  ;;  %v753_v52 = vld [vmem:[%s1653_s6] sm:$0xf] }
  0x12   :  { %1125 = vmatprep.subr.msk.mxu1 %vm118_vm0, %v85_v18  ;;  %100 = vperm.xlu1 %1160, %v94_v35   ;;  %v64_v49 = vld [vmem:[%s1649_s0 + $0x130] sm:$0xff]  ;;  %v31_v53 = vld [vmem:[%s1649_s0 + $0x28] sm:$0xff]  ;;  %v46_v55 = vld [vmem:[%s1649_s0 + $0xa0] sm:$0xff] }
  0x13   :  { %542 = vperm.xlu0 %1159, %v524_v40   ;;  %v63_v54 = vld [vmem:[%s1649_s0 + $0x128] sm:$0xff]  ;;  %v78_v56 = vld [vmem:[%s1649_s0 + $0x1a0] sm:$0xff]  ;;  %v45_v59 = vld [vmem:[%s1649_s0 + $0x98] sm:$0xff] }
  0x14   :  { %1086 = vmatpush3.xpose.msk.msra.mxu0 %vm118_vm0, %v37_v19  ;;  %v30_v57 = vld [vmem:[%s1649_s0 + $0x20] sm:$0xff]  ;;  %v77_v60 = vld [vmem:[%s1649_s0 + $0x198] sm:$0xff]  ;;  %v44_v63 = vld [vmem:[%s1649_s0 + $0x90] sm:$0xff] }
  0x15   :  { %1126 = vmatpush3.xpose.msk.msra.mxu1 %vm118_vm0, %v69_v20  ;;  %1087 = vmatprep.subr.msk.mxu0 %vm118_vm0, %v52_v21  ;;  %v62_v58 = vld [vmem:[%s1649_s0 + $0x120] sm:$0xff]  ;;  %v29_v61 = vld [vmem:[%s1649_s0 + $0x18] sm:$0xff]  ;;  %v76_v0 = vld [vmem:[%s1649_s0 + $0x190] sm:$0xff] }
  0x16   :  { %1127 = vmatprep.subr.msk.mxu1 %vm118_vm0, %v84_v22  ;;  %537 = vperm.xlu1 %1160, %v523_v41   ;;  %v61_v62 = vld [vmem:[%s1649_s0 + $0x118] sm:$0xff]  ;;  %v28_v1 = vld [vmem:[%s1649_s0 + $0x10] sm:$0xff]  ;;  %v43_v3 = vld [vmem:[%s1649_s0 + $0x88] sm:$0xff] }
  0x17   :  { %532 = vperm.xlu0 %1159, %v522_v46   ;;  %v60_v2 = vld [vmem:[%s1649_s0 + $0x110] sm:$0xff]  ;;  %v75_v4 = vld [vmem:[%s1649_s0 + $0x188] sm:$0xff]  ;;  %v42_v7 = vld [vmem:[%s1649_s0 + $0x80] sm:$0xff] }
  0x18   :  { %1088 = vmatpush3.xpose.msk.msra.mxu0 %vm118_vm0, %v36_v23  ;;  %v27_v5 = vld [vmem:[%s1649_s0 + $0x8] sm:$0xff]  ;;  %v74_v8 = vld [vmem:[%s1649_s0 + $0x180] sm:$0xff]  ;;  %v92_v12 = vld [vmem:[%s1650_s1 + $0x10] sm:$0xff] }
  0x19   :  { %1128 = vmatpush3.xpose.msk.msra.mxu1 %vm118_vm0, %v68_v24  ;;  %1089 = vmatprep.subr.msk.mxu0 %vm118_vm0, %v51_v25  ;;  %v59_v6 = vld [vmem:[%s1649_s0 + $0x108] sm:$0xff]  ;;  %v26_v9 = vld [vmem:[%s1649_s0] sm:$0xff]  ;;  %v93_v13 = vld [vmem:[%s1650_s1 + $0x18] sm:$0xff] }
  0x1a   :  { %1129 = vmatprep.subr.msk.mxu1 %vm118_vm0, %v83_v26  ;;  %527 = vperm.xlu1 %1160, %v521_v47   ;;  %v58_v10 = vld [vmem:[%s1649_s0 + $0x100] sm:$0xff]  ;;  %v91_v11 = vld [vmem:[%s1650_s1 + $0x8] sm:$0xff] }
  0x1b   :  { %756 = vperm.xlu0 %1159, %v753_v52  }
  0x1c   :  { %1090 = vmatpush3.xpose.msk.msra.mxu0 %vm118_vm0, %v35_v29 }
  0x1d   :  { %1130 = vmatpush3.xpose.msk.msra.mxu1 %vm118_vm0, %v67_v30  ;;  %1091 = vmatprep.subr.msk.mxu0 %vm118_vm0, %v50_v32 }
  0x1e   :  { %1131 = vmatprep.subr.msk.mxu1 %vm118_vm0, %v82_v33 }
  0x20   :  { %1092 = vmatpush3.xpose.msk.msra.mxu0 %vm118_vm0, %v34_v36 }
  0x21   :  { %1132 = vmatpush3.xpose.msk.msra.mxu1 %vm118_vm0, %v66_v37  ;;  %1093 = vmatprep.subr.msk.mxu0 %vm118_vm0, %v49_v38 }
  0x22   :  { %1133 = vmatprep.subr.msk.mxu1 %vm118_vm0, %v81_v39 }
  0x24   :  { %1094 = vmatpush3.xpose.msk.msra.mxu0 %vm118_vm0, %v33_v42 }
  0x25   :  { %1134 = vmatpush3.xpose.msk.msra.mxu1 %vm118_vm0, %v65_v43  ;;  %1095 = vmatprep.subr.msk.mxu0 %vm118_vm0, %v48_v44 }
  0x26   :  { %1135 = vmatprep.subr.msk.mxu1 %vm118_vm0, %v80_v45 }
  0x28   :  { %1096 = vmatpush3.xpose.msk.msra.mxu0 %vm118_vm0, %v32_v48 }
  0x29   :  { %1136 = vmatpush3.xpose.msk.msra.mxu1 %vm118_vm0, %v64_v49  ;;  %1097 = vmatprep.subr.msk.mxu0 %vm118_vm0, %v47_v50 }
  0x2a   :  { %1137 = vmatprep.subr.msk.mxu1 %vm118_vm0, %v79_v51 }
  0x2c   :  { %1098 = vmatpush3.xpose.msk.msra.mxu0 %vm118_vm0, %v31_v53 }
  0x2d   :  { %1138 = vmatpush3.xpose.msk.msra.mxu1 %vm118_vm0, %v63_v54  ;;  %1099 = vmatprep.subr.msk.mxu0 %vm118_vm0, %v46_v55 }
  0x2e   :  { %1139 = vmatprep.subr.msk.mxu1 %vm118_vm0, %v78_v56 }
  0x30   :  { %1100 = vmatpush3.xpose.msk.msra.mxu0 %vm118_vm0, %v30_v57 }
  0x31   :  { %1140 = vmatpush3.xpose.msk.msra.mxu1 %vm118_vm0, %v62_v58  ;;  %1101 = vmatprep.subr.msk.mxu0 %vm118_vm0, %v45_v59 }
  0x32   :  { %1141 = vmatprep.subr.msk.mxu1 %vm118_vm0, %v77_v60 }
  0x34   :  { %1102 = vmatpush3.xpose.msk.msra.mxu0 %vm118_vm0, %v29_v61 }
  0x35   :  { %1142 = vmatpush3.xpose.msk.msra.mxu1 %vm118_vm0, %v61_v62  ;;  %1103 = vmatprep.subr.msk.mxu0 %vm118_vm0, %v44_v63 }
  0x36   :  { %1143 = vmatprep.subr.msk.mxu1 %vm118_vm0, %v76_v0 }
  0x38   :  { %1104 = vmatpush3.xpose.msk.msra.mxu0 %vm118_vm0, %v28_v1  ;;  %v517_v1 = vld [vmem:[%s1654_s3] sm:$0xff] }
  0x39   :  { %1144 = vmatpush3.xpose.msk.msra.mxu1 %vm118_vm0, %v60_v2  ;;  %1105 = vmatprep.subr.msk.mxu0 %vm118_vm0, %v43_v3 }
  0x3a   :  { %1145 = vmatprep.subr.msk.mxu1 %vm118_vm0, %v75_v4  ;;  %v518_v4 = vld [vmem:[%s1654_s3 + $0x8] sm:$0xff] }
  0x3c   :  { %1106 = vmatpush3.xpose.msk.msra.mxu0 %vm118_vm0, %v27_v5  ;;  %v519_v5 = vld [vmem:[%s1654_s3 + $0x10] sm:$0xff] }
  0x3d   :  { %1146 = vmatpush3.xpose.msk.msra.mxu1 %vm118_vm0, %v59_v6  ;;  %1107 = vmatprep.subr.msk.mxu0 %vm118_vm0, %v42_v7  ;;  %v520_v6 = vld [vmem:[%s1654_s3 + $0x18] sm:$0xff] }
  0x3e   :  { %1147 = vmatprep.subr.msk.mxu1 %vm118_vm0, %v74_v8 }
  0x40   :  { %1108 = vmatpush3.xpose.msk.msra.mxu0 %vm118_vm0, %v26_v9 }
  0x41   :  { %1148 = vmatpush3.xpose.msk.msra.mxu1 %vm118_vm0, %v58_v10 }
  0x43   :  { %1110 = vmatmul.mubr.msk.f32.vlgmr.msra.gmra.mxu0 %vm118_vm0, %v1386_v27 }
  0x44   :  { %1150 = vmatmul.mubr.msk.f32.vlgmr.msra.gmra.mxu1 %vm118_vm0, %v1386_v27  ;;  %1111 = vmatprep.mubr.msk.f32.mxu0 %vm118_vm0, %v91_v11 }
  0x45   :  { %1151 = vmatprep.mubr.msk.f32.mxu1 %vm118_vm0, %v91_v11 }
  0x47   :  { %1112 = vmatmul.mubr.msk.f32.gmra.mxu0 %vm118_vm0, %v91_v11 }
  0x48   :  { %1152 = vmatmul.mubr.msk.f32.gmra.mxu1 %vm118_vm0, %v91_v11  ;;  %1113 = vmatprep.mubr.msk.f32.mxu0 %vm118_vm0, %v92_v12 }
  0x49   :  { %1153 = vmatprep.mubr.msk.f32.mxu1 %vm118_vm0, %v92_v12 }
  0x4b   :  { %1114 = vmatmul.mubr.msk.f32.gmra.mxu0 %vm118_vm0, %v92_v12 }
  0x4c   :  { %1154 = vmatmul.mubr.msk.f32.gmra.mxu1 %vm118_vm0, %v92_v12  ;;  %1115 = vmatprep.mubr.msk.f32.mxu0 %vm118_vm0, %v93_v13 }
  0x4d   :  { %1155 = vmatprep.mubr.msk.f32.mxu1 %vm118_vm0, %v93_v13 }
  0x4f   :  { %1116 = vmatmul.mubr.msk.f32.gmra.mxu0 %vm118_vm0, %v93_v13 }
  0x50   :  { %1156 = vmatmul.mubr.msk.f32.gmra.mxu1 %vm118_vm0, %v93_v13  ;;  %622 = vmatprep.mubr.f32.mxu0 %v1242_v14 }
  0x51   :  { %711 = vmatprep.mubr.f32.mxu1 %v1242_v14 }
  0x86   :  { %v116_v20 = vpop.permute.xlu0 %115 }
  0x89   :  { %v106_v15 = vpop.permute.xlu1 %105 }
  0x8a   :  { %v111_v31 = vpop.permute.xlu0 %110 }
  0x8d   :  { %v101_v21 = vpop.permute.xlu1 %100 }
  0x8e   :  { %v543_v9 = vpop.permute.xlu0 %542 }
  0x91   :  { %v538_v7 = vpop.permute.xlu1 %537 }
 0x103   :  { %v389_v16 = vpop.f32.mrf.mxu0 }
 0x104   :  { %v478_v17 = vpop.f32.mrf.mxu1  ;;  %v390_v24 = vadd.f32 %v389_v16, %v101_v21 }
 0x105   :  { %v391_v18 = vpop.f32.mrf.mxu0  ;;  %v479_v50 = vadd.f32 %v478_v17, %v101_v21 }
 0x106   :  { %v480_v19 = vpop.f32.mrf.mxu1  ;;  %v392_v27 = vadd.f32 %v391_v18, %v101_v21  ;;  %1161 = vtanh.f32 %v390_v24 }
 0x107   :  { %v395_v22 = vpop.f32.mrf.mxu0  ;;  %v481_v49 = vadd.f32 %v480_v19, %v101_v21  ;;  %v533_v19 = vpop.permute.xlu0 %532 }
 0x108   :  { %v484_v23 = vpop.f32.mrf.mxu1  ;;  %v396_v28 = vadd.f32 %v395_v22, %v106_v15  ;;  %1163 = vtanh.f32 %v392_v27 }
 0x109   :  { %v397_v25 = vpop.f32.mrf.mxu0  ;;  %v485_v48 = vadd.f32 %v484_v23, %v106_v15 }
 0x10a   :  { %v486_v26 = vpop.f32.mrf.mxu1  ;;  %v398_v32 = vadd.f32 %v397_v25, %v106_v15  ;;  %1165 = vtanh.f32 %v396_v28 }
 0x10b   :  { %v401_v29 = vpop.f32.mrf.mxu0  ;;  %v487_v47 = vadd.f32 %v486_v26, %v106_v15  ;;  %v528_v15 = vpop.permute.xlu1 %527 }
 0x10c   :  { %v490_v30 = vpop.f32.mrf.mxu1  ;;  %v402_v33 = vadd.f32 %v401_v29, %v111_v31  ;;  %1167 = vtanh.f32 %v398_v32 }
 0x10d   :  { %v403_v34 = vpop.f32.mrf.mxu0  ;;  %v491_v46 = vadd.f32 %v490_v30, %v111_v31 }
 0x10e   :  { %v492_v35 = vpop.f32.mrf.mxu1  ;;  %v404_v36 = vadd.f32 %v403_v34, %v111_v31  ;;  %1169 = vtanh.f32 %v402_v33 }
 0x10f   :  { %v407_v37 = vpop.f32.mrf.mxu0  ;;  %v493_v45 = vadd.f32 %v492_v35, %v111_v31 }
 0x110   :  { %v496_v38 = vpop.f32.mrf.mxu1  ;;  %v408_v39 = vadd.f32 %v407_v37, %v116_v20  ;;  %1171 = vtanh.f32 %v404_v36 }
 0x111   :  { %v409_v40 = vpop.f32.mrf.mxu0  ;;  %v497_v42 = vadd.f32 %v496_v38, %v116_v20 }
 0x112   :  { %v498_v41 = vpop.f32.mrf.mxu1  ;;  %v410_v43 = vadd.f32 %v409_v40, %v116_v20  ;;  %1173 = vtanh.f32 %v408_v39 }
 0x113   :  { %v499_v44 = vadd.f32 %v498_v41, %v116_v20  ;;  %v1162_v51 = vpop.eup %1161 }
 0x114   :  { %1175 = vtanh.f32 %v410_v43 }
 0x115   :  { %1177 = vtanh.f32 %v499_v44  ;;  %v1164_v52 = vpop.eup %1163 }
 0x116   :  { %1179 = vtanh.f32 %v497_v42 }
 0x117   :  { %1181 = vtanh.f32 %v493_v45  ;;  %v1166_v53 = vpop.eup %1165 }
 0x118   :  { %1183 = vtanh.f32 %v491_v46 }
 0x119   :  { %1185 = vtanh.f32 %v487_v47  ;;  %v1168_v54 = vpop.eup %1167 }
 0x11a   :  { %1187 = vtanh.f32 %v485_v48 }
 0x11b   :  { %1189 = vtanh.f32 %v481_v49  ;;  %v1170_v55 = vpop.eup %1169 }
 0x11c   :  { %1191 = vtanh.f32 %v479_v50 }
 0x11d   :  { %v1172_v56 = vpop.eup %1171 }
 0x11f   :  { %v1174_v57 = vpop.eup %1173 }
 0x121   :  { %v1176_v58 = vpop.eup %1175 }
 0x122   :  { %v1178_v59 = vpop.eup %1177  ;;  %582 = vmatprep.subr.mxu0 %v1176_v58 }
 0x123   :  { %v1180_v60 = vpop.eup %1179  ;;  %671 = vmatprep.subr.mxu1 %v1178_v59  ;;  %583 = vmatpush1.msra.mxu0 %v1174_v57  ;;  %v752_v57 = vld [vmem:[%s1655_s5] sm:$0xf] }
 0x124   :  { %v1182_v61 = vpop.eup %1181  ;;  %672 = vmatpush1.msra.mxu1 %v1180_v60  ;;  %584 = vmatprep.subr.mxu0 %v1172_v56  ;;  %v757_v60 = vpop.permute.xlu0 %756 }
 0x125   :  { %v1184_v62 = vpop.eup %1183  ;;  %673 = vmatprep.subr.mxu1 %v1182_v61  ;;  %585 = vmatpush1.msra.mxu0 %v1170_v55 }
 0x126   :  { %v1186_v63 = vpop.eup %1185  ;;  %674 = vmatpush1.msra.mxu1 %v1184_v62  ;;  %586 = vmatprep.subr.mxu0 %v1168_v54 }
 0x127   :  { %v1188_v0 = vpop.eup %1187  ;;  %675 = vmatprep.subr.mxu1 %v1186_v63  ;;  %587 = vmatpush1.msra.mxu0 %v1166_v53 }
 0x128   :  { %v1190_v2 = vpop.eup %1189  ;;  %676 = vmatpush1.msra.mxu1 %v1188_v0  ;;  %588 = vmatprep.subr.mxu0 %v1164_v52 }
 0x129   :  { %v1192_v3 = vpop.eup %1191  ;;  %677 = vmatprep.subr.mxu1 %v1190_v2  ;;  %589 = vmatpush1.msra.mxu0 %v1162_v51 }
 0x12a   :  { %678 = vmatpush1.msra.mxu1 %v1192_v3  ;;  %1067 = vmatmul.mubr.msk.f32.vlgmr.msra.gmra.mxu0 %vm545_vm1, %v517_v1 }
 0x12b   :  { %1071 = vmatmul.mubr.msk.f32.vlgmr.msra.gmra.mxu1 %vm545_vm1, %v517_v1  ;;  %628 = vmatprep.mubr.f32.mxu0 %v1242_v14 }
 0x12c   :  { %717 = vmatprep.mubr.f32.mxu1 %v1242_v14 }
 0x12e   :  { %1068 = vmatmul.mubr.msk.f32.gmra.mxu0 %vm545_vm1, %v518_v4 }
 0x12f   :  { %1072 = vmatmul.mubr.msk.f32.gmra.mxu1 %vm545_vm1, %v518_v4  ;;  %634 = vmatprep.mubr.f32.mxu0 %v1242_v14 }
 0x130   :  { %723 = vmatprep.mubr.f32.mxu1 %v1242_v14 }
 0x132   :  { %1069 = vmatmul.mubr.msk.f32.gmra.mxu0 %vm545_vm1, %v519_v5 }
 0x133   :  { %1073 = vmatmul.mubr.msk.f32.gmra.mxu1 %vm545_vm1, %v519_v5  ;;  %640 = vmatprep.mubr.f32.mxu0 %v1242_v14 }
 0x134   :  { %729 = vmatprep.mubr.f32.mxu1 %v1242_v14 }
 0x136   :  { %1070 = vmatmul.mubr.msk.f32.gmra.mxu0 %vm545_vm1, %v520_v6 }
 0x137   :  { %1074 = vmatmul.mubr.msk.f32.gmra.mxu1 %vm545_vm1, %v520_v6  ;;  %826 = vmatprep.mubr.f32.mxu0 %v1242_v14 }
 0x138   :  { %897 = vmatprep.mubr.f32.mxu1 %v1242_v14 }
 0x1ea   :  { %v624_v8 = vpop.f32.mrf.mxu0 }
 0x1eb   :  { %v713_v10 = vpop.f32.mrf.mxu1  ;;  %v625_v17 = vadd.f32 %v624_v8, %v528_v15 }
 0x1ec   :  { %v626_v11 = vpop.f32.mrf.mxu0  ;;  %v714_v42 = vadd.f32 %v713_v10, %v528_v15 }
 0x1ed   :  { %v715_v12 = vpop.f32.mrf.mxu1  ;;  %v627_v20 = vadd.f32 %v626_v11, %v528_v15  ;;  %1193 = vtanh.f32 %v625_v17 }
 0x1ee   :  { %v630_v13 = vpop.f32.mrf.mxu0  ;;  %v716_v41 = vadd.f32 %v715_v12, %v528_v15 }
 0x1ef   :  { %v719_v16 = vpop.f32.mrf.mxu1  ;;  %v631_v22 = vadd.f32 %v630_v13, %v533_v19  ;;  %1195 = vtanh.f32 %v627_v20 }
 0x1f0   :  { %v632_v18 = vpop.f32.mrf.mxu0  ;;  %v720_v40 = vadd.f32 %v719_v16, %v533_v19 }
 0x1f1   :  { %v721_v21 = vpop.f32.mrf.mxu1  ;;  %v633_v24 = vadd.f32 %v632_v18, %v533_v19  ;;  %1197 = vtanh.f32 %v631_v22 }
 0x1f2   :  { %v636_v23 = vpop.f32.mrf.mxu0  ;;  %v722_v39 = vadd.f32 %v721_v21, %v533_v19 }
 0x1f3   :  { %v725_v25 = vpop.f32.mrf.mxu1  ;;  %v637_v14 = vadd.f32 %v636_v23, %v538_v7  ;;  %1199 = vtanh.f32 %v633_v24 }
 0x1f4   :  { %v638_v26 = vpop.f32.mrf.mxu0  ;;  %v726_v38 = vadd.f32 %v725_v25, %v538_v7 }
 0x1f5   :  { %v639_v27 = vadd.f32 %v638_v26, %v538_v7  ;;  %v727_v28 = vpop.f32.mrf.mxu1  ;;  %1201 = vtanh.f32 %v637_v14 }
 0x1f6   :  { %v642_v29 = vpop.f32.mrf.mxu0  ;;  %v728_v36 = vadd.f32 %v727_v28, %v538_v7 }
 0x1f7   :  { %v643_v30 = vadd.f32 %v642_v29, %v543_v9  ;;  %v731_v31 = vpop.f32.mrf.mxu1  ;;  %1203 = vtanh.f32 %v639_v27 }
 0x1f8   :  { %v644_v32 = vpop.f32.mrf.mxu0  ;;  %v732_v33 = vadd.f32 %v731_v31, %v543_v9 }
 0x1f9   :  { %v645_v34 = vadd.f32 %v644_v32, %v543_v9  ;;  %v733_v35 = vpop.f32.mrf.mxu1  ;;  %1205 = vtanh.f32 %v643_v30 }
 0x1fa   :  { %v734_v37 = vadd.f32 %v733_v35, %v543_v9  ;;  %v1194_v43 = vpop.eup %1193 }
 0x1fb   :  { %1207 = vtanh.f32 %v645_v34 }
 0x1fc   :  { %1209 = vtanh.f32 %v734_v37  ;;  %v1196_v44 = vpop.eup %1195 }
 0x1fd   :  { %1211 = vtanh.f32 %v732_v33 }
 0x1fe   :  { %1213 = vtanh.f32 %v728_v36  ;;  %v1198_v45 = vpop.eup %1197 }
 0x1ff   :  { %1215 = vtanh.f32 %v726_v38 }
 0x200   :  { %1217 = vtanh.f32 %v722_v39  ;;  %v1200_v46 = vpop.eup %1199 }
 0x201   :  { %1219 = vtanh.f32 %v720_v40 }
 0x202   :  { %1221 = vtanh.f32 %v716_v41  ;;  %v1202_v47 = vpop.eup %1201 }
 0x203   :  { %1223 = vtanh.f32 %v714_v42 }
 0x204   :  { %v1204_v48 = vpop.eup %1203 }
 0x206   :  { %v1206_v49 = vpop.eup %1205 }
 0x208   :  { %v1208_v50 = vpop.eup %1207 }
 0x209   :  { %v1210_v51 = vpop.eup %1209  ;;  %786 = vmatprep.subr.mxu0 %v1208_v50 }
 0x20a   :  { %v1212_v52 = vpop.eup %1211  ;;  %857 = vmatprep.subr.mxu1 %v1210_v51  ;;  %787 = vmatpush1.msra.mxu0 %v1206_v49 }
 0x20b   :  { %v1214_v53 = vpop.eup %1213  ;;  %858 = vmatpush1.msra.mxu1 %v1212_v52  ;;  %788 = vmatprep.subr.mxu0 %v1204_v48 }
 0x20c   :  { %v1216_v54 = vpop.eup %1215  ;;  %859 = vmatprep.subr.mxu1 %v1214_v53  ;;  %789 = vmatpush1.msra.mxu0 %v1202_v47 }
 0x20d   :  { %v1218_v55 = vpop.eup %1217  ;;  %860 = vmatpush1.msra.mxu1 %v1216_v54  ;;  %790 = vmatprep.subr.mxu0 %v1200_v46 }
 0x20e   :  { %v1220_v56 = vpop.eup %1219  ;;  %861 = vmatprep.subr.mxu1 %v1218_v55  ;;  %791 = vmatpush1.msra.mxu0 %v1198_v45 }
 0x20f   :  { %v1222_v58 = vpop.eup %1221  ;;  %862 = vmatpush1.msra.mxu1 %v1220_v56  ;;  %792 = vmatprep.subr.mxu0 %v1196_v44 }
 0x210   :  { %v1224_v59 = vpop.eup %1223  ;;  %863 = vmatprep.subr.mxu1 %v1222_v58  ;;  %793 = vmatpush1.msra.mxu0 %v1194_v43 }
 0x211   :  { %864 = vmatpush1.msra.mxu1 %v1224_v59  ;;  %1075 = vmatmul.mubr.msk.f32.vlgmr.msra.gmra.mxu0 %vm545_vm1, %v752_v57 }
 0x212   :  { %1076 = vmatmul.mubr.msk.f32.vlgmr.msra.gmra.mxu1 %vm545_vm1, %v752_v57 }
 0x2d1   :  { %v828_v61 = vpop.f32.mrf.mxu0 }
 0x2d2   :  { %v829_v62 = vadd.f32 %v828_v61, %v757_v60  ;;  %v899_v63 = vpop.f32.mrf.mxu1 }
 0x2d3   :  { %v900_v0 = vadd.f32 %v899_v63, %v757_v60  ;;  %v830_v1 = vpop.f32.mrf.mxu0 }
 0x2d4   :  { %v905_v2 = vsel %vm904_vm2, %v829_v62, -inf  ;;  %v831_v3 = vadd.f32 %v830_v1, %v757_v60  ;;  %v901_v4 = vpop.f32.mrf.mxu1 }
 0x2d5   :  { %v906_v5 = vrot.slane %v905_v2, 4  ;;  %v919_v6 = vsel %vm904_vm2, %v900_v0, -inf  ;;  %v902_v7 = vadd.f32 %v901_v4, %v757_v60 }
 0x2d6   :  { %v920_v8 = vrot.slane %v919_v6, 4  ;;  %v912_v9 = vsel %vm904_vm2, %v831_v3, -inf }
 0x2d7   :  { %v907_v10 = vmax.f32 %v905_v2, %v906_v5  ;;  %v913_v11 = vrot.slane %v912_v9, 4  ;;  %v926_v12 = vsel %vm904_vm2, %v902_v7, -inf }
 0x2d8   :  { %v921_v13 = vmax.f32 %v919_v6, %v920_v8  ;;  %v927_v15 = vrot.slane %v926_v12, 4 }
 0x2d9   :  { %v908_v16 = vrot.slane %v907_v10, 2  ;;  %v914_v17 = vmax.f32 %v912_v9, %v913_v11 }
 0x2da   :  { %v922_v18 = vrot.slane %v921_v13, 2  ;;  %v928_v19 = vmax.f32 %v926_v12, %v927_v15 }
 0x2db   :  { %v909_v20 = vmax.f32 %v907_v10, %v908_v16  ;;  %v915_v21 = vrot.slane %v914_v17, 2 }
 0x2dc   :  { %v923_v22 = vmax.f32 %v921_v13, %v922_v18  ;;  %v929_v23 = vrot.slane %v928_v19, 2 }
 0x2dd   :  { %v910_v24 = vrot.slane %v909_v20, 1  ;;  %v916_v25 = vmax.f32 %v914_v17, %v915_v21 }
 0x2de   :  { %v924_v14 = vrot.slane %v923_v22, 1  ;;  %v930_v26 = vmax.f32 %v928_v19, %v929_v23 }
 0x2df   :  { %v911_v27 = vmax.f32 %v909_v20, %v910_v24  ;;  %v917_v28 = vrot.slane %v916_v25, 1 }
 0x2e0   :  { %v925_v29 = vmax.f32 %v923_v22, %v924_v14  ;;  %v931_v30 = vrot.slane %v930_v26, 1 }
 0x2e1   :  { %v933_v31 = vsub.f32 %v829_v62, %v911_v27  ;;  %v918_v32 = vmax.f32 %v916_v25, %v917_v28 }
 0x2e2   :  { %v935_v33 = vsub.f32 %v900_v0, %v925_v29  ;;  %v932_v34 = vmax.f32 %v930_v26, %v931_v30 }
 0x2e3   :  { %v937_v35 = vmul.f32 1.442695, %v933_v31  ;;  %v934_v36 = vsub.f32 %v831_v3, %v918_v32 }
 0x2e4   :  { %v941_v37 = vmul.f32 1.442695, %v935_v33  ;;  %v936_v38 = vsub.f32 %v902_v7, %v932_v34 }
 0x2e5   :  { %1225 = vpow2.f32 %v937_v35  ;;  %v939_v39 = vmul.f32 1.442695, %v934_v36 }
 0x2e6   :  { %1227 = vpow2.f32 %v941_v37  ;;  %v943_v40 = vmul.f32 1.442695, %v936_v38 }
 0x2e7   :  { %1229 = vpow2.f32 %v939_v39 }
 0x2e8   :  { %1231 = vpow2.f32 %v943_v40 }
 0x2f2   :  { %v1226_v41 = vpop.eup %1225 }
 0x2f3   :  { %v1228_v42 = vpop.eup %1227  ;;  %v945_v43 = vsel %vm904_vm2, %v1226_v41, 0.0 }
 0x2f4   :  { %v1230_v44 = vpop.eup %1229  ;;  %v946_v45 = vrot.slane %v945_v43, 4  ;;  %v959_v46 = vsel %vm904_vm2, %v1228_v42, 0.0 }
 0x2f5   :  { %v1232_v47 = vpop.eup %1231  ;;  %v960_v48 = vrot.slane %v959_v46, 4  ;;  %v952_v49 = vsel %vm904_vm2, %v1230_v44, 0.0 }
 0x2f6   :  { %v947_v50 = vadd.f32 %v946_v45, %v945_v43  ;;  %v953_v51 = vrot.slane %v952_v49, 4  ;;  %v966_v52 = vsel %vm904_vm2, %v1232_v47, 0.0 }
 0x2f7   :  { %v961_v53 = vadd.f32 %v960_v48, %v959_v46  ;;  %v967_v54 = vrot.slane %v966_v52, 4 }
 0x2f8   :  { %v948_v55 = vrot.slane %v947_v50, 2  ;;  %v954_v56 = vadd.f32 %v953_v51, %v952_v49 }
 0x2f9   :  { %v962_v57 = vrot.slane %v961_v53, 2  ;;  %v968_v58 = vadd.f32 %v967_v54, %v966_v52 }
 0x2fa   :  { %v949_v59 = vadd.f32 %v948_v55, %v947_v50  ;;  %v955_v60 = vrot.slane %v954_v56, 2 }
 0x2fb   :  { %v963_v61 = vadd.f32 %v962_v57, %v961_v53  ;;  %v969_v62 = vrot.slane %v968_v58, 2 }
 0x2fc   :  { %v950_v63 = vrot.slane %v949_v59, 1  ;;  %v956_v0 = vadd.f32 %v955_v60, %v954_v56 }
 0x2fd   :  { %v964_v1 = vrot.slane %v963_v61, 1  ;;  %v970_v2 = vadd.f32 %v969_v62, %v968_v58 }
 0x2fe   :  { %v951_v3 = vadd.f32 %v950_v63, %v949_v59  ;;  %v957_v4 = vrot.slane %v956_v0, 1 }
 0x2ff   :  { %v965_v5 = vadd.f32 %v964_v1, %v963_v61  ;;  %v971_v6 = vrot.slane %v970_v2, 1 }
 0x300   :  { %1233 = vrcp.f32 %v951_v3  ;;  %v958_v7 = vadd.f32 %v957_v4, %v956_v0 }
 0x301   :  { %1235 = vrcp.f32 %v965_v5  ;;  %v972_v8 = vadd.f32 %v971_v6, %v970_v2 }
 0x302   :  { %1237 = vrcp.f32 %v958_v7 }
 0x303   :  { %1239 = vrcp.f32 %v972_v8 }
 0x30d   :  { %v1234_v9 = vpop.eup %1233 }
 0x30e   :  { %v1236_v10 = vpop.eup %1235  ;;  %v974_v13 = vmul.f32 %v1234_v9, %v1226_v41 }
 0x30f   :  { %v1238_v11 = vpop.eup %1237  ;;  %v978_v16 = vmul.f32 %v1236_v10, %v1228_v42 }
 0x310   :  { %v1240_v12 = vpop.eup %1239  ;;  %v976_v15 = vmul.f32 %v1238_v11, %v1230_v44 }
 0x311   :  { %v980_v17 = vmul.f32 %v1240_v12, %v1232_v47 }
 0x312   :  { %v985_v18 = vcombine.low %v974_v13, %v976_v15 }
 0x313   :  { %v986_v19 = vcombine.low %v978_v16, %v980_v17 }
 0x314   :  { %989 = vst [vmem:[%s1656_s7] sm:$0xff] %v985_v18 }
 0x315   :  { %990 = vst [vmem:[%s1656_s7 + $0x8] sm:$0xff] %v986_v19 }

</bundles_post_ra>
